<compile_context>
chip_gen: v7x
topology: tpu7x:2x2x1
jax: 0.10.0
libtpu: 0.0.40
codegen_flags: <defaults>
</compile_context>

<pallas_src>
import jax
import jax.numpy as jnp
from jax.experimental import pallas as pl
from jax.experimental.pallas import tpu as pltpu

STATE_SPACE = 4
ACTION_SPACE = 2

# Full-array block resident in VMEM; no grid, no pipelining machinery.
_VMEM_SPEC = pl.BlockSpec(memory_space=pltpu.MemorySpace.VMEM)


def _identity1_kernel(x_ref, ox_ref):
    # forward() just returns the parameter tensor.
    ox_ref[...] = x_ref[...]


def _identity2_kernel(x_ref, y_ref, ox_ref, oy_ref):
    # Fused pass-through of both parameter tensors in a single launch.
    ox_ref[...] = x_ref[...]
    oy_ref[...] = y_ref[...]


def _forward_x(x):
    """Materialize `x` through a single no-grid Pallas call (aliased in/out)."""
    return pl.pallas_call(
        _identity1_kernel,
        out_shape=jax.ShapeDtypeStruct(x.shape, x.dtype),
        in_specs=[_VMEM_SPEC],
        out_specs=_VMEM_SPEC,
        input_output_aliases={0: 0},
    )(x)


def _forward_xy(x, y):
    """Fused single Pallas call returning (x, y); both outputs alias inputs."""
    return pl.pallas_call(
        _identity2_kernel,
        out_shape=(
            jax.ShapeDtypeStruct(x.shape, x.dtype),
            jax.ShapeDtypeStruct(y.shape, y.dtype),
        ),
        in_specs=[_VMEM_SPEC, _VMEM_SPEC],
        out_specs=(_VMEM_SPEC, _VMEM_SPEC),
        input_output_aliases={0: 0, 1: 1},
    )(x, y)


class Distiller:
    """JAX/Pallas equivalent of the PyTorch Distiller module."""

    def __init__(
        self,
        batch_size,
        state_size=STATE_SPACE,
        action_size=ACTION_SPACE,
        inner_lr=0.02,
        inner_momentum=0.5,
        conditional_generation=True,
        key=None,
    ):
        if key is None:
            key = jax.random.PRNGKey(0)
        kx, ky = jax.random.split(key)

        self.conditional_generation = conditional_generation
        # Parameter init mirrors torch.randn (standard normal), deterministic.
        self.x = jax.random.normal(kx, (batch_size, state_size), dtype=jnp.float32)
        if not conditional_generation:
            self.y = jax.random.normal(ky, (batch_size, action_size), dtype=jnp.float32)
        if inner_lr is not None:
            self.inner_lr = jnp.asarray(inner_lr, dtype=jnp.float32)
        if inner_momentum is not None:
            self.inner_momentum = jnp.asarray(inner_momentum, dtype=jnp.float32)

    def forward(self):
        if self.conditional_generation:
            return _forward_x(self.x)
        else:
            # One fused launch instead of two separate identity calls.
            return _forward_xy(self.x, self.y)

    __call__ = forward


if __name__ == "__main__":
    key = jax.random.PRNGKey(0)

    batch_size = 8  # small synthetic batch

    # Conditional-generation variant: forward() -> x
    distiller_cond = Distiller(batch_size, conditional_generation=True, key=key)
    out_x = distiller_cond()
    out_x = jax.block_until_ready(out_x)
    assert out_x.shape == (batch_size, STATE_SPACE)
    assert jnp.allclose(out_x, distiller_cond.x)

    # Unconditional variant: forward() -> (x, y), fused in one pallas_call
    distiller_uncond = Distiller(batch_size, conditional_generation=False, key=key)
    out_x2, out_y2 = distiller_uncond()
    out_x2 = jax.block_until_ready(out_x2)
    out_y2 = jax.block_until_ready(out_y2)
    assert out_x2.shape == (batch_size, STATE_SPACE)
    assert out_y2.shape == (batch_size, ACTION_SPACE)
    assert jnp.allclose(out_x2, distiller_uncond.x)
    assert jnp.allclose(out_y2, distiller_uncond.y)

    print("KERNEL_OK")
</pallas_src>

<mosaic_0001>
module attributes {stable_mosaic.version = 11 : i64} {
  func.func @_identity1_kernel(%arg0: memref<8x4xf32, #tpu.memory_space<vmem>>, %arg1: memref<8x4xf32, #tpu.memory_space<vmem>>) attributes {dimension_semantics = [], scalar_prefetch = 0 : i64, scratch_operands = 0 : i64, tpu.core_type = #tpu.core_type<tc>} {
    %c0 = arith.constant 0 : index
    %c0_0 = arith.constant 0 : index
    %0 = vector.load %arg0[%c0, %c0_0] : memref<8x4xf32, #tpu.memory_space<vmem>>, vector<8x4xf32>
    %c0_1 = arith.constant 0 : index
    %c0_2 = arith.constant 0 : index
    %1 = vector.load %arg1[%c0_1, %c0_2] : memref<8x4xf32, #tpu.memory_space<vmem>>, vector<8x4xf32>
    tpu.vector_store %arg1[%c0_1, %c0_2], %0 {strides = array<i32>} : memref<8x4xf32, #tpu.memory_space<vmem>>, vector<8x4xf32>,
    return
  }
}

</mosaic_0001>

<bundles_post_ra>
// kernel: tpu_custom_call.1
= control target key start
LH: loop header
LB: loop body
LE: loop exit
PB: predicated region body
PF: predicated region fallthrough
CT: control target
= control target key end

     0   :  { %vm9_vm0 = vcmask 31744   ;;  %s31_s0 = inlined_call_operand.vmem [shape: f32[8,4], index: 0, kind: input, shape index: {}, may-alias: {0,1}]   ;;  %s32_s1 = inlined_call_operand.vmem [shape: f32[8,4], index: 1, kind: output, shape index: {}, may-alias: {0,1}]  }
   0x1   :  { %v8_v0 = vld [vmem:[%s31_s0] sm:$0xff] }
   0x2   :  { %10 = vst.msk [vmem:[%s32_s1] sm:$0xff] %vm9_vm0, %v8_v0 }

</bundles_post_ra>
